<compile_context>
chip_gen: v6e
topology: v6e:2x2x1
jax: 0.10.0
libtpu: 0.0.40
codegen_flags: <defaults>
</compile_context>

<pallas_src>
import functools

import jax
import jax.numpy as jnp
from jax.experimental import pallas as pl
from jax.experimental.pallas import tpu as pltpu


def _round_up(x, m):
    return ((x + m - 1) // m) * m


def _leaky_relu(x, slope=0.2):
    # max(x, 0.2*x) == LeakyReLU(0.2): one vmul + one vmax.
    return jnp.maximum(x, slope * x)


# --------------------------------------------------------------------------
# Kernel
# --------------------------------------------------------------------------
def decoder_lstm_kernel(
    h_ref, s_ref, z_ref, h0_ref, c0_ref,          # activations (batch tile)
    wh_ref, ws_ref, wz_ref, whh_ref, bl_ref,      # LSTM params (lane-padded)
    w1_ref, b1_ref, w2_ref, b2_ref,               # fc params (lane-padded)
    w3_ref, b3_ref, w4_ref, b4_ref,
    out_ref, h1_ref, c1_ref,
    *, hp,
):
    # ---- single LSTM cell step (PyTorch gate order: i, f, g, o) ----------
    # Gates are laid out as 4 blocks of width hp (a multiple of 128), so the
    # slices below are vreg-aligned and the gate math is pure VPU work.
    gates = (
        jnp.dot(h_ref[...], wh_ref[...], preferred_element_type=jnp.float32)
        + jnp.dot(s_ref[...], ws_ref[...], preferred_element_type=jnp.float32)
        + jnp.dot(z_ref[...], wz_ref[...], preferred_element_type=jnp.float32)
        + jnp.dot(h0_ref[...], whh_ref[...], preferred_element_type=jnp.float32)
        + bl_ref[...]                              # (1, 4*hp) sublane broadcast
    )
    sig = jax.nn.sigmoid(gates)                    # one EUP stream for i/f/o
    i_g = sig[:, 0 * hp:1 * hp]
    f_g = sig[:, 1 * hp:2 * hp]
    o_g = sig[:, 3 * hp:4 * hp]
    g_g = jnp.tanh(gates[:, 2 * hp:3 * hp])

    c1 = f_g * c0_ref[...] + i_g * g_g
    h1 = o_g * jnp.tanh(c1)

    # ---- fc head (all intermediates 128-lane wide, zero-padded weights) --
    y = jnp.dot(h1, w1_ref[...], preferred_element_type=jnp.float32) + b1_ref[...]
    y = jax.nn.sigmoid(y)
    y = jnp.dot(y, w2_ref[...], preferred_element_type=jnp.float32) + b2_ref[...]
    y = _leaky_relu(y)
    y = jnp.dot(y, w3_ref[...], preferred_element_type=jnp.float32) + b3_ref[...]
    y = _leaky_relu(y)
    y = jnp.dot(y, w4_ref[...], preferred_element_type=jnp.float32) + b4_ref[...]

    out_ref[...] = y
    h1_ref[...] = h1
    c1_ref[...] = c1


# --------------------------------------------------------------------------
# One-time parameter preparation (transpose + lane padding + gate remap)
# --------------------------------------------------------------------------
def prepare_params(params, h_dim, s_dim, z_dim, hidden_size):
    H = hidden_size
    Hp = _round_up(H, 128)          # padded hidden width (lane-dense)
    F = 128                         # padded fc width

    def lstm_w(w, kp):
        # w: (4H, K) -> (kp, 4*Hp), gate-blocked along lanes, zero padded.
        K = w.shape[1]
        wt = w.astype(jnp.float32).T.reshape(K, 4, H)
        wt = jnp.pad(wt, ((0, kp - K), (0, 0), (0, Hp - H)))
        return wt.reshape(kp, 4 * Hp)

    w_ih = params["w_ih"]           # (4H, input_size)
    hk = _round_up(h_dim, 8)
    sk = _round_up(s_dim, 8)
    zk = _round_up(z_dim, 8)

    wh_t = lstm_w(w_ih[:, :h_dim], hk)
    ws_t = lstm_w(w_ih[:, h_dim:h_dim + s_dim], sk)
    wz_t = lstm_w(w_ih[:, h_dim + s_dim:], zk)
    whh_t = lstm_w(params["w_hh"], Hp)

    b = (params["b_ih"] + params["b_hh"]).astype(jnp.float32).reshape(4, H)
    b_lstm = jnp.pad(b, ((0, 0), (0, Hp - H))).reshape(1, 4 * Hp)

    def fc(w, bias, kp, npad):
        wt = w.astype(jnp.float32).T
        wt = jnp.pad(wt, ((0, kp - wt.shape[0]), (0, npad - wt.shape[1])))
        bp = jnp.pad(bias.astype(jnp.float32), (0, npad - bias.shape[0]))
        return wt, bp.reshape(1, -1)

    w1_t, b1 = fc(params["w1"], params["b1"], Hp, F)
    w2_t, b2 = fc(params["w2"], params["b2"], F, F)
    w3_t, b3 = fc(params["w3"], params["b3"], F, F)
    w4_t, b4 = fc(params["w4"], params["b4"], F, F)

    return dict(wh_t=wh_t, ws_t=ws_t, wz_t=wz_t, whh_t=whh_t, b_lstm=b_lstm,
                w1_t=w1_t, b1=b1, w2_t=w2_t, b2=b2,
                w3_t=w3_t, b3=b3, w4_t=w4_t, b4=b4)


# --------------------------------------------------------------------------
# Jittable forward wrapper
# --------------------------------------------------------------------------
def decoder_lstm_forward(h, s, z, h0, c0, prep):
    """Returns (out, (h1, c1)) matching DecoderLstm.forward + state update."""
    bs = h.shape[0]
    H = h0.shape[1]
    Hp = prep["whh_t"].shape[0]
    F = prep["w4_t"].shape[1]
    hk = prep["wh_t"].shape[0]
    sk = prep["ws_t"].shape[0]
    zk = prep["wz_t"].shape[0]

    b_tile = 128 if bs > 128 else _round_up(bs, 8)
    bs_pad = _round_up(bs, b_tile)
    grid = (bs_pad // b_tile,)

    def pad(a, rows, cols):
        a = a.astype(jnp.float32)
        return jnp.pad(a, ((0, rows - a.shape[0]), (0, cols - a.shape[1])))

    h_in = pad(h, bs_pad, hk)
    s_in = pad(s, bs_pad, sk)
    z_in = pad(z, bs_pad, zk)
    h0_in = pad(h0, bs_pad, Hp)
    c0_in = pad(c0, bs_pad, Hp)

    def bspec(cols):
        return pl.BlockSpec((b_tile, cols), lambda i: (i, 0))

    def wspec(arr):
        return pl.BlockSpec(arr.shape, lambda i: (0, 0))

    weights = (prep["wh_t"], prep["ws_t"], prep["wz_t"], prep["whh_t"],
               prep["b_lstm"], prep["w1_t"], prep["b1"], prep["w2_t"],
               prep["b2"], prep["w3_t"], prep["b3"], prep["w4_t"], prep["b4"])

    out_pad, h1_pad, c1_pad = pl.pallas_call(
        functools.partial(decoder_lstm_kernel, hp=Hp),
        grid=grid,
        out_shape=(
            jax.ShapeDtypeStruct((bs_pad, F), jnp.float32),
            jax.ShapeDtypeStruct((bs_pad, Hp), jnp.float32),
            jax.ShapeDtypeStruct((bs_pad, Hp), jnp.float32),
        ),
        in_specs=[bspec(hk), bspec(sk), bspec(zk), bspec(Hp), bspec(Hp)]
                 + [wspec(w) for w in weights],
        out_specs=(bspec(F), bspec(Hp), bspec(Hp)),
        compiler_params=pltpu.CompilerParams(
            dimension_semantics=("parallel",)),
    )(h_in, s_in, z_in, h0_in, c0_in, *weights)

    out = out_pad[:bs, :2]
    h1 = h1_pad[:bs, :H]
    c1 = c1_pad[:bs, :H]
    return out, (h1, c1)


# --------------------------------------------------------------------------
# Pure-JAX reference and synthetic init
# --------------------------------------------------------------------------
def _reference_forward(h, s, z, h0, c0, p):
    x = jnp.concatenate([h, s, z], axis=1)
    H = h0.shape[1]
    gates = x @ p["w_ih"].T + p["b_ih"] + h0 @ p["w_hh"].T + p["b_hh"]
    i = jax.nn.sigmoid(gates[:, 0 * H:1 * H])
    f = jax.nn.sigmoid(gates[:, 1 * H:2 * H])
    g = jnp.tanh(gates[:, 2 * H:3 * H])
    o = jax.nn.sigmoid(gates[:, 3 * H:4 * H])
    c1 = f * c0 + i * g
    h1 = o * jnp.tanh(c1)
    y = jax.nn.sigmoid(h1 @ p["w1"].T + p["b1"])
    y = jax.nn.leaky_relu(y @ p["w2"].T + p["b2"], 0.2)
    y = jax.nn.leaky_relu(y @ p["w3"].T + p["b3"], 0.2)
    y = y @ p["w4"].T + p["b4"]
    return y, (h1, c1)


def init_params(key, input_size, hidden_size):
    keys = jax.random.split(key, 12)

    def u(k, shape, fan):
        bound = 1.0 / jnp.sqrt(fan)
        return jax.random.uniform(k, shape, jnp.float32, -bound, bound)

    H = hidden_size
    return {
        "w_ih": u(keys[0], (4 * H, input_size), H),
        "w_hh": u(keys[1], (4 * H, H), H),
        "b_ih": u(keys[2], (4 * H,), H),
        "b_hh": u(keys[3], (4 * H,), H),
        "w1": u(keys[4], (64, H), H), "b1": u(keys[5], (64,), H),
        "w2": u(keys[6], (64, 64), 64), "b2": u(keys[7], (64,), 64),
        "w3": u(keys[8], (32, 64), 64), "b3": u(keys[9], (32,), 64),
        "w4": u(keys[10], (2, 32), 32), "b4": u(keys[11], (2,), 32),
    }


if __name__ == "__main__":
    key = jax.random.PRNGKey(0)
    bs = 2
    h_dim, s_dim, z_dim = 16, 8, 8          # input_size = 32
    hidden_size = 32
    input_size = h_dim + s_dim + z_dim

    k_h, k_s, k_z, k_h0, k_c0, k_p = jax.random.split(key, 6)
    h = jax.random.normal(k_h, (bs, h_dim), jnp.float32)
    s = jax.random.normal(k_s, (bs, s_dim), jnp.float32)
    z = jax.random.normal(k_z, (bs, z_dim), jnp.float32)
    h0 = jax.random.normal(k_h0, (bs, hidden_size), jnp.float32)
    c0 = jax.random.normal(k_c0, (bs, hidden_size), jnp.float32)
    params = init_params(k_p, input_size, hidden_size)

    # One-time weight prep (transpose / pad / gate remap) outside the hot path.
    prep = prepare_params(params, h_dim, s_dim, z_dim, hidden_size)
    fwd = jax.jit(decoder_lstm_forward)

    out, (h1, c1) = fwd(h, s, z, h0, c0, prep)
    jax.block_until_ready((out, h1, c1))

    ref_out, (ref_h1, ref_c1) = _reference_forward(h, s, z, h0, c0, params)
    assert out.shape == (bs, 2) and h1.shape == (bs, hidden_size)
    assert jnp.allclose(out, ref_out, atol=1e-3, rtol=1e-3)
    assert jnp.allclose(h1, ref_h1, atol=1e-3, rtol=1e-3)
    assert jnp.allclose(c1, ref_c1, atol=1e-3, rtol=1e-3)

    print("KERNEL_OK")
</pallas_src>

<mosaic_0001>
module attributes {stable_mosaic.version = 11 : i64} {
  func.func @decoder_lstm_kernel(%arg0: i32, %arg1: memref<8x16xf32, #tpu.memory_space<vmem>>, %arg2: memref<8x8xf32, #tpu.memory_space<vmem>>, %arg3: memref<8x8xf32, #tpu.memory_space<vmem>>, %arg4: memref<8x128xf32, #tpu.memory_space<vmem>>, %arg5: memref<8x128xf32, #tpu.memory_space<vmem>>, %arg6: memref<16x512xf32, #tpu.memory_space<vmem>>, %arg7: memref<8x512xf32, #tpu.memory_space<vmem>>, %arg8: memref<8x512xf32, #tpu.memory_space<vmem>>, %arg9: memref<128x512xf32, #tpu.memory_space<vmem>>, %arg10: memref<1x512xf32, #tpu.memory_space<vmem>>, %arg11: memref<128x128xf32, #tpu.memory_space<vmem>>, %arg12: memref<1x128xf32, #tpu.memory_space<vmem>>, %arg13: memref<128x128xf32, #tpu.memory_space<vmem>>, %arg14: memref<1x128xf32, #tpu.memory_space<vmem>>, %arg15: memref<128x128xf32, #tpu.memory_space<vmem>>, %arg16: memref<1x128xf32, #tpu.memory_space<vmem>>, %arg17: memref<128x128xf32, #tpu.memory_space<vmem>>, %arg18: memref<1x128xf32, #tpu.memory_space<vmem>>, %arg19: memref<8x128xf32, #tpu.memory_space<vmem>>, %arg20: memref<8x128xf32, #tpu.memory_space<vmem>>, %arg21: memref<8x128xf32, #tpu.memory_space<vmem>>) attributes {dimension_semantics = [#tpu.dimension_semantics<parallel>], iteration_bounds = array<i64: 1>, scalar_prefetch = 0 : i64, scratch_operands = 0 : i64, tpu.core_type = #tpu.core_type<tc>, window_params = [{transform_indices = @transform_0, window_bounds = array<i64: 8, 16>}, {transform_indices = @transform_1, window_bounds = array<i64: 8, 8>}, {transform_indices = @transform_2, window_bounds = array<i64: 8, 8>}, {transform_indices = @transform_3, window_bounds = array<i64: 8, 128>}, {transform_indices = @transform_4, window_bounds = array<i64: 8, 128>}, {pipeline_mode = #tpu.pipeline_mode<synchronous>, transform_indices = @transform_5, window_bounds = array<i64: 16, 512>}, {pipeline_mode = #tpu.pipeline_mode<synchronous>, transform_indices = @transform_6, window_bounds = array<i64: 8, 512>}, {pipeline_mode = #tpu.pipeline_mode<synchronous>, transform_indices = @transform_7, window_bounds = array<i64: 8, 512>}, {pipeline_mode = #tpu.pipeline_mode<synchronous>, transform_indices = @transform_8, window_bounds = array<i64: 128, 512>}, {pipeline_mode = #tpu.pipeline_mode<synchronous>, transform_indices = @transform_9, window_bounds = array<i64: 1, 512>}, {pipeline_mode = #tpu.pipeline_mode<synchronous>, transform_indices = @transform_10, window_bounds = array<i64: 128, 128>}, {pipeline_mode = #tpu.pipeline_mode<synchronous>, transform_indices = @transform_11, window_bounds = array<i64: 1, 128>}, {pipeline_mode = #tpu.pipeline_mode<synchronous>, transform_indices = @transform_12, window_bounds = array<i64: 128, 128>}, {pipeline_mode = #tpu.pipeline_mode<synchronous>, transform_indices = @transform_13, window_bounds = array<i64: 1, 128>}, {pipeline_mode = #tpu.pipeline_mode<synchronous>, transform_indices = @transform_14, window_bounds = array<i64: 128, 128>}, {pipeline_mode = #tpu.pipeline_mode<synchronous>, transform_indices = @transform_15, window_bounds = array<i64: 1, 128>}, {pipeline_mode = #tpu.pipeline_mode<synchronous>, transform_indices = @transform_16, window_bounds = array<i64: 128, 128>}, {pipeline_mode = #tpu.pipeline_mode<synchronous>, transform_indices = @transform_17, window_bounds = array<i64: 1, 128>}, {transform_indices = @transform_18, window_bounds = array<i64: 8, 128>}, {transform_indices = @transform_19, window_bounds = array<i64: 8, 128>}, {transform_indices = @transform_20, window_bounds = array<i64: 8, 128>}]} {
    %c0 = arith.constant 0 : index
    %c0_0 = arith.constant 0 : index
    %0 = vector.load %arg1[%c0, %c0_0] : memref<8x16xf32, #tpu.memory_space<vmem>>, vector<8x16xf32>
    %c0_1 = arith.constant 0 : index
    %c0_2 = arith.constant 0 : index
    %1 = vector.load %arg6[%c0_1, %c0_2] : memref<16x512xf32, #tpu.memory_space<vmem>>, vector<16x512xf32>
    %cst = arith.constant dense<0.000000e+00> : vector<8x512xf32>
    %2 = tpu.matmul %0, %1, %cst {dimension_numbers = #tpu.dot_dimension_numbers<[1], [0], [0], [1], [0, 0, 1, 1], [], []>} : vector<8x16xf32>, vector<16x512xf32>, vector<8x512xf32> -> vector<8x512xf32>
    %c0_3 = arith.constant 0 : index
    %c0_4 = arith.constant 0 : index
    %3 = vector.load %arg2[%c0_3, %c0_4] : memref<8x8xf32, #tpu.memory_space<vmem>>, vector<8x8xf32>
    %c0_5 = arith.constant 0 : index
    %c0_6 = arith.constant 0 : index
    %4 = vector.load %arg7[%c0_5, %c0_6] : memref<8x512xf32, #tpu.memory_space<vmem>>, vector<8x512xf32>
    %cst_7 = arith.constant dense<0.000000e+00> : vector<8x512xf32>
    %5 = tpu.matmul %3, %4, %cst_7 {dimension_numbers = #tpu.dot_dimension_numbers<[1], [0], [0], [1], [0, 0, 1, 1], [], []>} : vector<8x8xf32>, vector<8x512xf32>, vector<8x512xf32> -> vector<8x512xf32>
    %6 = arith.addf %2, %5 : vector<8x512xf32>
    %c0_8 = arith.constant 0 : index
    %c0_9 = arith.constant 0 : index
    %7 = vector.load %arg3[%c0_8, %c0_9] : memref<8x8xf32, #tpu.memory_space<vmem>>, vector<8x8xf32>
    %c0_10 = arith.constant 0 : index
    %c0_11 = arith.constant 0 : index
    %8 = vector.load %arg8[%c0_10, %c0_11] : memref<8x512xf32, #tpu.memory_space<vmem>>, vector<8x512xf32>
    %cst_12 = arith.constant dense<0.000000e+00> : vector<8x512xf32>
    %9 = tpu.matmul %7, %8, %cst_12 {dimension_numbers = #tpu.dot_dimension_numbers<[1], [0], [0], [1], [0, 0, 1, 1], [], []>} : vector<8x8xf32>, vector<8x512xf32>, vector<8x512xf32> -> vector<8x512xf32>
    %10 = arith.addf %6, %9 : vector<8x512xf32>
    %c0_13 = arith.constant 0 : index
    %c0_14 = arith.constant 0 : index
    %11 = vector.load %arg4[%c0_13, %c0_14] : memref<8x128xf32, #tpu.memory_space<vmem>>, vector<8x128xf32>
    %c0_15 = arith.constant 0 : index
    %c0_16 = arith.constant 0 : index
    %12 = vector.load %arg9[%c0_15, %c0_16] : memref<128x512xf32, #tpu.memory_space<vmem>>, vector<128x512xf32>
    %cst_17 = arith.constant dense<0.000000e+00> : vector<8x512xf32>
    %13 = tpu.matmul %11, %12, %cst_17 {dimension_numbers = #tpu.dot_dimension_numbers<[1], [0], [0], [1], [0, 0, 1, 1], [], []>} : vector<8x128xf32>, vector<128x512xf32>, vector<8x512xf32> -> vector<8x512xf32>
    %14 = arith.addf %10, %13 : vector<8x512xf32>
    %c0_18 = arith.constant 0 : index
    %c0_19 = arith.constant 0 : index
    %15 = vector.load %arg10[%c0_18, %c0_19] : memref<1x512xf32, #tpu.memory_space<vmem>>, vector<1x512xf32>
    %16 = vector.broadcast %15 : vector<1x512xf32> to vector<8x512xf32>
    %17 = arith.addf %14, %16 : vector<8x512xf32>
    %18 = arith.negf %17 : vector<8x512xf32>
    %19 = math.exp %18 : vector<8x512xf32>
    %cst_20 = arith.constant 1.000000e+00 : f32
    %20 = vector.broadcast %cst_20 : f32 to vector<8x512xf32>
    %21 = arith.addf %20, %19 : vector<8x512xf32>
    %22 = arith.divf %20, %21 : vector<8x512xf32>
    %23 = vector.extract_strided_slice %22 {offsets = [0, 0], sizes = [8, 128], strides = [1, 1]} : vector<8x512xf32> to vector<8x128xf32>
    %24 = vector.extract_strided_slice %22 {offsets = [0, 128], sizes = [8, 128], strides = [1, 1]} : vector<8x512xf32> to vector<8x128xf32>
    %25 = vector.extract_strided_slice %22 {offsets = [0, 384], sizes = [8, 128], strides = [1, 1]} : vector<8x512xf32> to vector<8x128xf32>
    %26 = vector.extract_strided_slice %17 {offsets = [0, 256], sizes = [8, 128], strides = [1, 1]} : vector<8x512xf32> to vector<8x128xf32>
    %27 = math.tanh %26 : vector<8x128xf32>
    %c0_21 = arith.constant 0 : index
    %c0_22 = arith.constant 0 : index
    %28 = vector.load %arg5[%c0_21, %c0_22] : memref<8x128xf32, #tpu.memory_space<vmem>>, vector<8x128xf32>
    %29 = arith.mulf %24, %28 : vector<8x128xf32>
    %30 = arith.mulf %23, %27 : vector<8x128xf32>
    %31 = arith.addf %29, %30 : vector<8x128xf32>
    %32 = math.tanh %31 : vector<8x128xf32>
    %33 = arith.mulf %25, %32 : vector<8x128xf32>
    %c0_23 = arith.constant 0 : index
    %c0_24 = arith.constant 0 : index
    %34 = vector.load %arg11[%c0_23, %c0_24] : memref<128x128xf32, #tpu.memory_space<vmem>>, vector<128x128xf32>
    %cst_25 = arith.constant dense<0.000000e+00> : vector<8x128xf32>
    %35 = tpu.matmul %33, %34, %cst_25 {dimension_numbers = #tpu.dot_dimension_numbers<[1], [0], [0], [1], [0, 0, 1, 1], [], []>} : vector<8x128xf32>, vector<128x128xf32>, vector<8x128xf32> -> vector<8x128xf32>
    %c0_26 = arith.constant 0 : index
    %c0_27 = arith.constant 0 : index
    %36 = vector.load %arg12[%c0_26, %c0_27] : memref<1x128xf32, #tpu.memory_space<vmem>>, vector<1x128xf32>
    %37 = vector.broadcast %36 : vector<1x128xf32> to vector<8x128xf32>
    %38 = arith.addf %35, %37 : vector<8x128xf32>
    %39 = arith.negf %38 : vector<8x128xf32>
    %40 = math.exp %39 : vector<8x128xf32>
    %cst_28 = arith.constant 1.000000e+00 : f32
    %41 = vector.broadcast %cst_28 : f32 to vector<8x128xf32>
    %42 = arith.addf %41, %40 : vector<8x128xf32>
    %43 = arith.divf %41, %42 : vector<8x128xf32>
    %c0_29 = arith.constant 0 : index
    %c0_30 = arith.constant 0 : index
    %44 = vector.load %arg13[%c0_29, %c0_30] : memref<128x128xf32, #tpu.memory_space<vmem>>, vector<128x128xf32>
    %cst_31 = arith.constant dense<0.000000e+00> : vector<8x128xf32>
    %45 = tpu.matmul %43, %44, %cst_31 {dimension_numbers = #tpu.dot_dimension_numbers<[1], [0], [0], [1], [0, 0, 1, 1], [], []>} : vector<8x128xf32>, vector<128x128xf32>, vector<8x128xf32> -> vector<8x128xf32>
    %c0_32 = arith.constant 0 : index
    %c0_33 = arith.constant 0 : index
    %46 = vector.load %arg14[%c0_32, %c0_33] : memref<1x128xf32, #tpu.memory_space<vmem>>, vector<1x128xf32>
    %47 = vector.broadcast %46 : vector<1x128xf32> to vector<8x128xf32>
    %48 = arith.addf %45, %47 : vector<8x128xf32>
    %cst_34 = arith.constant 2.000000e-01 : f32
    %49 = vector.broadcast %cst_34 : f32 to vector<8x128xf32>
    %50 = arith.mulf %49, %48 : vector<8x128xf32>
    %51 = arith.maximumf %48, %50 : vector<8x128xf32>
    %c0_35 = arith.constant 0 : index
    %c0_36 = arith.constant 0 : index
    %52 = vector.load %arg15[%c0_35, %c0_36] : memref<128x128xf32, #tpu.memory_space<vmem>>, vector<128x128xf32>
    %cst_37 = arith.constant dense<0.000000e+00> : vector<8x128xf32>
    %53 = tpu.matmul %51, %52, %cst_37 {dimension_numbers = #tpu.dot_dimension_numbers<[1], [0], [0], [1], [0, 0, 1, 1], [], []>} : vector<8x128xf32>, vector<128x128xf32>, vector<8x128xf32> -> vector<8x128xf32>
    %c0_38 = arith.constant 0 : index
    %c0_39 = arith.constant 0 : index
    %54 = vector.load %arg16[%c0_38, %c0_39] : memref<1x128xf32, #tpu.memory_space<vmem>>, vector<1x128xf32>
    %55 = vector.broadcast %54 : vector<1x128xf32> to vector<8x128xf32>
    %56 = arith.addf %53, %55 : vector<8x128xf32>
    %cst_40 = arith.constant 2.000000e-01 : f32
    %57 = vector.broadcast %cst_40 : f32 to vector<8x128xf32>
    %58 = arith.mulf %57, %56 : vector<8x128xf32>
    %59 = arith.maximumf %56, %58 : vector<8x128xf32>
    %c0_41 = arith.constant 0 : index
    %c0_42 = arith.constant 0 : index
    %60 = vector.load %arg17[%c0_41, %c0_42] : memref<128x128xf32, #tpu.memory_space<vmem>>, vector<128x128xf32>
    %cst_43 = arith.constant dense<0.000000e+00> : vector<8x128xf32>
    %61 = tpu.matmul %59, %60, %cst_43 {dimension_numbers = #tpu.dot_dimension_numbers<[1], [0], [0], [1], [0, 0, 1, 1], [], []>} : vector<8x128xf32>, vector<128x128xf32>, vector<8x128xf32> -> vector<8x128xf32>
    %c0_44 = arith.constant 0 : index
    %c0_45 = arith.constant 0 : index
    %62 = vector.load %arg18[%c0_44, %c0_45] : memref<1x128xf32, #tpu.memory_space<vmem>>, vector<1x128xf32>
    %63 = vector.broadcast %62 : vector<1x128xf32> to vector<8x128xf32>
    %64 = arith.addf %61, %63 : vector<8x128xf32>
    %c0_46 = arith.constant 0 : index
    %c0_47 = arith.constant 0 : index
    %65 = vector.load %arg19[%c0_46, %c0_47] : memref<8x128xf32, #tpu.memory_space<vmem>>, vector<8x128xf32>
    tpu.vector_store %arg19[%c0_46, %c0_47], %64 {strides = array<i32>} : memref<8x128xf32, #tpu.memory_space<vmem>>, vector<8x128xf32>,
    %c0_48 = arith.constant 0 : index
    %c0_49 = arith.constant 0 : index
    %66 = vector.load %arg20[%c0_48, %c0_49] : memref<8x128xf32, #tpu.memory_space<vmem>>, vector<8x128xf32>
    tpu.vector_store %arg20[%c0_48, %c0_49], %33 {strides = array<i32>} : memref<8x128xf32, #tpu.memory_space<vmem>>, vector<8x128xf32>,
    %c0_50 = arith.constant 0 : index
    %c0_51 = arith.constant 0 : index
    %67 = vector.load %arg21[%c0_50, %c0_51] : memref<8x128xf32, #tpu.memory_space<vmem>>, vector<8x128xf32>
    tpu.vector_store %arg21[%c0_50, %c0_51], %31 {strides = array<i32>} : memref<8x128xf32, #tpu.memory_space<vmem>>, vector<8x128xf32>,
    return
  }
  func.func @transform_0(%arg0: i32) -> (i32, i32) {
    %c0_i32 = arith.constant 0 : i32
    %c0_i32_0 = arith.constant 0 : i32
    return %arg0, %c0_i32 : i32, i32
  }
  func.func @transform_1(%arg0: i32) -> (i32, i32) {
    %c0_i32 = arith.constant 0 : i32
    %c0_i32_0 = arith.constant 0 : i32
    return %arg0, %c0_i32 : i32, i32
  }
  func.func @transform_2(%arg0: i32) -> (i32, i32) {
    %c0_i32 = arith.constant 0 : i32
    %c0_i32_0 = arith.constant 0 : i32
    return %arg0, %c0_i32 : i32, i32
  }
  func.func @transform_3(%arg0: i32) -> (i32, i32) {
    %c0_i32 = arith.constant 0 : i32
    %c0_i32_0 = arith.constant 0 : i32
    return %arg0, %c0_i32 : i32, i32
  }
  func.func @transform_4(%arg0: i32) -> (i32, i32) {
    %c0_i32 = arith.constant 0 : i32
    %c0_i32_0 = arith.constant 0 : i32
    return %arg0, %c0_i32 : i32, i32
  }
  func.func @transform_5(%arg0: i32) -> (i32, i32) {
    %c0_i32 = arith.constant 0 : i32
    %c0_i32_0 = arith.constant 0 : i32
    %c0_i32_1 = arith.constant 0 : i32
    return %c0_i32, %c0_i32_0 : i32, i32
  }
  func.func @transform_6(%arg0: i32) -> (i32, i32) {
    %c0_i32 = arith.constant 0 : i32
    %c0_i32_0 = arith.constant 0 : i32
    %c0_i32_1 = arith.constant 0 : i32
    return %c0_i32, %c0_i32_0 : i32, i32
  }
  func.func @transform_7(%arg0: i32) -> (i32, i32) {
    %c0_i32 = arith.constant 0 : i32
    %c0_i32_0 = arith.constant 0 : i32
    %c0_i32_1 = arith.constant 0 : i32
    return %c0_i32, %c0_i32_0 : i32, i32
  }
  func.func @transform_8(%arg0: i32) -> (i32, i32) {
    %c0_i32 = arith.constant 0 : i32
    %c0_i32_0 = arith.constant 0 : i32
    %c0_i32_1 = arith.constant 0 : i32
    return %c0_i32, %c0_i32_0 : i32, i32
  }
  func.func @transform_9(%arg0: i32) -> (i32, i32) {
    %c0_i32 = arith.constant 0 : i32
    %c0_i32_0 = arith.constant 0 : i32
    %c0_i32_1 = arith.constant 0 : i32
    return %c0_i32, %c0_i32_0 : i32, i32
  }
  func.func @transform_10(%arg0: i32) -> (i32, i32) {
    %c0_i32 = arith.constant 0 : i32
    %c0_i32_0 = arith.constant 0 : i32
    %c0_i32_1 = arith.constant 0 : i32
    return %c0_i32, %c0_i32_0 : i32, i32
  }
  func.func @transform_11(%arg0: i32) -> (i32, i32) {
    %c0_i32 = arith.constant 0 : i32
    %c0_i32_0 = arith.constant 0 : i32
    %c0_i32_1 = arith.constant 0 : i32
    return %c0_i32, %c0_i32_0 : i32, i32
  }
  func.func @transform_12(%arg0: i32) -> (i32, i32) {
    %c0_i32 = arith.constant 0 : i32
    %c0_i32_0 = arith.constant 0 : i32
    %c0_i32_1 = arith.constant 0 : i32
    return %c0_i32, %c0_i32_0 : i32, i32
  }
  func.func @transform_13(%arg0: i32) -> (i32, i32) {
    %c0_i32 = arith.constant 0 : i32
    %c0_i32_0 = arith.constant 0 : i32
    %c0_i32_1 = arith.constant 0 : i32
    return %c0_i32, %c0_i32_0 : i32, i32
  }
  func.func @transform_14(%arg0: i32) -> (i32, i32) {
    %c0_i32 = arith.constant 0 : i32
    %c0_i32_0 = arith.constant 0 : i32
    %c0_i32_1 = arith.constant 0 : i32
    return %c0_i32, %c0_i32_0 : i32, i32
  }
  func.func @transform_15(%arg0: i32) -> (i32, i32) {
    %c0_i32 = arith.constant 0 : i32
    %c0_i32_0 = arith.constant 0 : i32
    %c0_i32_1 = arith.constant 0 : i32
    return %c0_i32, %c0_i32_0 : i32, i32
  }
  func.func @transform_16(%arg0: i32) -> (i32, i32) {
    %c0_i32 = arith.constant 0 : i32
    %c0_i32_0 = arith.constant 0 : i32
    %c0_i32_1 = arith.constant 0 : i32
    return %c0_i32, %c0_i32_0 : i32, i32
  }
  func.func @transform_17(%arg0: i32) -> (i32, i32) {
    %c0_i32 = arith.constant 0 : i32
    %c0_i32_0 = arith.constant 0 : i32
    %c0_i32_1 = arith.constant 0 : i32
    return %c0_i32, %c0_i32_0 : i32, i32
  }
  func.func @transform_18(%arg0: i32) -> (i32, i32) {
    %c0_i32 = arith.constant 0 : i32
    %c0_i32_0 = arith.constant 0 : i32
    return %arg0, %c0_i32 : i32, i32
  }
  func.func @transform_19(%arg0: i32) -> (i32, i32) {
    %c0_i32 = arith.constant 0 : i32
    %c0_i32_0 = arith.constant 0 : i32
    return %arg0, %c0_i32 : i32, i32
  }
  func.func @transform_20(%arg0: i32) -> (i32, i32) {
    %c0_i32 = arith.constant 0 : i32
    %c0_i32_0 = arith.constant 0 : i32
    return %arg0, %c0_i32 : i32, i32
  }
}

</mosaic_0001>

<bundles_post_ra>
// kernel: decoder_lstm_forward.1
= control target key start
LH: loop header
LB: loop body
LE: loop exit
PB: predicated region body
PF: predicated region fallthrough
CT: control target
= control target key end

     0   :  { %s1977_s0 = inlined_call_operand.vmem [shape: f32[8,16], index: 0, kind: input, shape index: {}]   ;;  %s1978_s1 = inlined_call_operand.vmem [shape: f32[8,8], index: 1, kind: input, shape index: {}]   ;;  %s1979_s2 = inlined_call_operand.vmem [shape: f32[8,8], index: 2, kind: input, shape index: {}]   ;;  %s1980_s3 = inlined_call_operand.vmem [shape: f32[8,128], index: 3, kind: input, shape index: {}]   ;;  %s1981_s4 = inlined_call_operand.vmem [shape: f32[8,128], index: 4, kind: input, shape index: {}]   ;;  %s1982_s5 = inlined_call_operand.vmem [shape: f32[16,512], index: 5, kind: input, shape index: {}]   ;;  %s1983_s6 = inlined_call_operand.hbm [shape: f32[8,512], index: 6, kind: input, shape index: {}]   ;;  %s1984_s7 = inlined_call_operand.hbm [shape: f32[8,512], index: 7, kind: input, shape index: {}]   ;;  %s1985_s8 = inlined_call_operand.hbm [shape: f32[128,512], index: 8, kind: input, shape index: {}]   ;;  %s1986_s9 = inlined_call_operand.vmem [shape: f32[1,512], index: 9, kind: input, shape index: {}]   ;;  %s1987_s10 = inlined_call_operand.hbm [shape: f32[128,128], index: 10, kind: input, shape index: {}]   ;;  %s1988_s11 = inlined_call_operand.vmem [shape: f32[1,128], index: 11, kind: input, shape index: {}]   ;;  %s1989_s12 = inlined_call_operand.hbm [shape: f32[128,128], index: 12, kind: input, shape index: {}]   ;;  %s1990_s13 = inlined_call_operand.vmem [shape: f32[1,128], index: 13, kind: input, shape index: {}]   ;;  %s1991_s14 = inlined_call_operand.hbm [shape: f32[128,128], index: 14, kind: input, shape index: {}]   ;;  %s1992_s15 = inlined_call_operand.vmem [shape: f32[1,128], index: 15, kind: input, shape index: {}]   ;;  %s1993_s16 = inlined_call_operand.hbm [shape: f32[128,128], index: 16, kind: input, shape index: {}]   ;;  %s1994_s17 = inlined_call_operand.vmem [shape: f32[1,128], index: 17, kind: input, shape index: {}]   ;;  %s1995_s18 = inlined_call_operand.vmem [shape: f32[8,128], index: 18, kind: output, shape index: {0}]   ;;  %s1996_s19 = inlined_call_operand.vmem [shape: f32[8,128], index: 19, kind: output, shape index: {1}]   ;;  %s1997_s20 = inlined_call_operand.vmem [shape: f32[8,128], index: 20, kind: output, shape index: {2}]  }
   0x1   :  { %1998 = sst [smem:[#allocation17_spill]] %s1977_s0 }
   0x2   :  { %1999 = sst [smem:[#allocation18_spill]] %s1978_s1 }
   0x3   :  { %2000 = sst [smem:[#allocation19_spill]] %s1979_s2 }
   0x4   :  { %2001 = sst [smem:[#allocation20_spill]] %s1980_s3 }
   0x5   :  { %2002 = sst [smem:[#allocation21_spill]] %s1981_s4 }
   0x6   :  { %26 = vsyncpa [#allocation3], 0 }
   0x7   :  { %27 = vsyncpa [#allocation5], 0 }
   0x8   :  { %28 = vsyncpa [#allocation8], 0 }
   0x9   :  { %29 = vsyncpa [#allocation11], 0  ;;  %s1679_s1 = smov [#allocation4]   ;;  %s1680_s23 = smov [#allocation7]  }
   0xa   :  { %s58_s22 = sshll.u32 %s1679_s1, 4  ;;  %s81_s24 = sshll.u32 %s1680_s23, 4  ;;  %s59_s22 = int_to_ptr.vmem [resolvable:$true] %s58_s22  ;;  %s82_s24 = int_to_ptr.vmem [resolvable:$true] %s81_s24 }
   0xb   :  { %s1539_s2 = scalar_lea.vmem %s59_s22, 512  ;;  %p1544_p1 = scmp.lt.s32.totalorder %s59_s22, %s59_s22 }
   0xc   :  { %p1540_p0 = scmp.ne.s32.totalorder %s59_s22, %s1539_s2  ;;  %p1545_p2 = scmp.lt.s32.totalorder %s1539_s2, %s1539_s2 }
   0xe   :  { %p1546_p3 = por %p1545_p2, %p1544_p1 }
  0x10   :  { %p1547_p4 = pnand %p1546_p3, %p1540_p0 }
  0x12   :  { %1550 = shalt.err (!%p1547_p4)
}
  0x13   :  { %61 = dma.hbm_to_vmem [thread:$0]  %s1984_s7, 512, %s59_s22, [#allocation5]  }
  0x14   :  { %s1559_s26 = scalar_lea.vmem %s82_s24, 2048  ;;  %p1564_p6 = scmp.lt.s32.totalorder %s82_s24, %s82_s24 }
  0x15   :  { %p1560_p5 = scmp.ne.s32.totalorder %s82_s24, %s1559_s26  ;;  %p1565_p7 = scmp.lt.s32.totalorder %s1559_s26, %s1559_s26 }
  0x17   :  { %p1566_p8 = por %p1565_p7, %p1564_p6 }
  0x19   :  { %p1567_p9 = pnand %p1566_p8, %p1560_p5 }
  0x1b   :  { %1570 = shalt.err (!%p1567_p9)
}
  0x1c   :  { %s1681_s27 = smov 128   ;;  %s1682_s28 = smov 8  }
  0x1d   :  { %87 = dma.hbm_to_vmem [thread:$0]  %s1987_s10, 2048, %s82_s24, [#allocation8], %s1681_s27, %s1681_s27, %s1682_s28  }
  0x1e   :  { %s1683_s30 = smov [#allocation10]   ;;  %s1684_s21 = smov [#allocation2]  }
  0x1f   :  { %s109_s0 = sshll.u32 %s1683_s30, 4  ;;  %s48_s7 = sshll.u32 %s1684_s21, 4  ;;  %s110_s0 = int_to_ptr.vmem [resolvable:$true] %s109_s0  ;;  %s49_s7 = int_to_ptr.vmem [resolvable:$true] %s48_s7 }
  0x20   :  { %s1579_s1 = scalar_lea.vmem %s110_s0, 2048  ;;  %p1584_p11 = scmp.lt.s32.totalorder %s110_s0, %s110_s0 }
  0x21   :  { %p1580_p10 = scmp.ne.s32.totalorder %s110_s0, %s1579_s1  ;;  %p1585_p12 = scmp.lt.s32.totalorder %s1579_s1, %s1579_s1 }
  0x23   :  { %p1586_p13 = por %p1585_p12, %p1584_p11 }
  0x25   :  { %p1587_p0 = pnand %p1586_p13, %p1580_p10 }
  0x27   :  { %1590 = shalt.err (!%p1587_p0)
}
  0x28   :  { %115 = dma.hbm_to_vmem [thread:$0]  %s1991_s14, 2048, %s110_s0, [#allocation11], %s1681_s27, %s1681_s27, %s1682_s28  }
  0x29   :  { %s1599_s10 = scalar_lea.vmem %s49_s7, 512  ;;  %p1604_p2 = scmp.lt.s32.totalorder %s49_s7, %s49_s7 }
  0x2a   :  { %p1600_p1 = scmp.ne.s32.totalorder %s49_s7, %s1599_s10  ;;  %p1605_p3 = scmp.lt.s32.totalorder %s1599_s10, %s1599_s10 }
  0x2c   :  { %p1606_p4 = por %p1605_p3, %p1604_p2 }
  0x2e   :  { %p1607_p5 = pnand %p1606_p4, %p1600_p1 }
  0x30   :  { %1610 = shalt.err (!%p1607_p5)
}
  0x31   :  { %51 = dma.hbm_to_vmem [thread:$0]  %s1983_s6, 512, %s49_s7, [#allocation3]  }
  0x32   :  { %s1685_s25 = smov [#allocation6]  }
  0x33   :  { %s67_s3 = sshll.u32 %s1685_s25, 4  ;;  %s68_s3 = int_to_ptr.vmem [resolvable:$true] %s67_s3 }
  0x34   :  { %s1619_s26 = scalar_lea.vmem %s68_s3, 8192  ;;  %p1624_p7 = scmp.lt.s32.totalorder %s68_s3, %s68_s3 }
  0x35   :  { %p1620_p6 = scmp.ne.s32.totalorder %s68_s3, %s1619_s26  ;;  %p1625_p8 = scmp.lt.s32.totalorder %s1619_s26, %s1619_s26 }
  0x37   :  { %p1626_p9 = por %p1625_p8, %p1624_p7 }
  0x39   :  { %p1627_p10 = pnand %p1626_p9, %p1620_p6 }
  0x3b   :  { %1630 = shalt.err (!%p1627_p10)
}
  0x3c   :  { %s1686_s14 = smov 512   ;;  %s1687_s4 = smov 32  }
  0x3d   :  { %73 = dma.hbm_to_vmem [thread:$0]  %s1985_s8, 8192, %s68_s3, [#allocation5], %s1686_s14, %s1686_s14, %s1687_s4  }
  0x3e   :  { %s1688_s0 = smov [#allocation9]   ;;  %s1689_s6 = smov [#allocation12]  }
  0x3f   :  { %s95_s21 = sshll.u32 %s1688_s0, 4  ;;  %s123_s7 = sshll.u32 %s1689_s6, 4  ;;  %s96_s21 = int_to_ptr.vmem [resolvable:$true] %s95_s21  ;;  %s124_s7 = int_to_ptr.vmem [resolvable:$true] %s123_s7 }
  0x40   :  { %s1639_s1 = scalar_lea.vmem %s96_s21, 2048  ;;  %p1644_p12 = scmp.lt.s32.totalorder %s96_s21, %s96_s21 }
  0x41   :  { %p1640_p11 = scmp.ne.s32.totalorder %s96_s21, %s1639_s1  ;;  %p1645_p13 = scmp.lt.s32.totalorder %s1639_s1, %s1639_s1 }
  0x43   :  { %p1646_p0 = por %p1645_p13, %p1644_p12 }
  0x45   :  { %p1647_p1 = pnand %p1646_p0, %p1640_p11 }
  0x47   :  { %1650 = shalt.err (!%p1647_p1)
}
  0x48   :  { %101 = dma.hbm_to_vmem [thread:$0]  %s1989_s12, 2048, %s96_s21, [#allocation8], %s1681_s27, %s1681_s27, %s1682_s28  }
  0x49   :  { %s1659_s8 = scalar_lea.vmem %s124_s7, 2048  ;;  %p1664_p3 = scmp.lt.s32.totalorder %s124_s7, %s124_s7 }
  0x4a   :  { %p1660_p2 = scmp.ne.s32.totalorder %s124_s7, %s1659_s8  ;;  %p1665_p4 = scmp.lt.s32.totalorder %s1659_s8, %s1659_s8 }
  0x4c   :  { %p1666_p5 = por %p1665_p4, %p1664_p3 }
  0x4e   :  { %p1667_p6 = pnand %p1666_p5, %p1660_p2 }
  0x50   :  { %1670 = shalt.err (!%p1667_p6)
}
  0x51   :  { %129 = dma.hbm_to_vmem [thread:$0]  %s1993_s16, 2048, %s124_s7, [#allocation11], %s1681_s27, %s1681_s27, %s1682_s28  }
  0x52   :  { %1671 = dma.done.wait [#allocation3], 512  }
  0x53   :  { %1672 = vsyncadd [#allocation3], 4294966784 }
  0x54   :  { %1673 = dma.done.wait [#allocation5], 8704  }
  0x55   :  { %1674 = vsyncadd [#allocation5], 4294958592 }
  0x56   :  { %1675 = dma.done.wait [#allocation8], 4096  }
  0x57   :  { %1676 = vsyncadd [#allocation8], 4294963200 }
  0x58   :  { %1677 = dma.done.wait [#allocation11], 4096  }
  0x59   :  { %1678 = vsyncadd [#allocation11], 4294963200  ;;  %v1690_v0 = vmov 0.0   ;;  %v164_v1 = vld [vmem:[#allocation2 + $0x8] sm:$0xff]  ;;  %v166_v2 = vld [vmem:[#allocation2 + $0x18] sm:$0xff]  ;;  %vm167_vm0 = vcmask 64512  }
  0x5a   :  { %235 = vmatprep.mubr.f32.mxu0 %v1690_v0  ;;  %306 = vmatprep.mubr.f32.mxu1 %v1690_v0  ;;  %v163_v3 = vld [vmem:[#allocation2] sm:$0xff]  ;;  %v165_v4 = vld [vmem:[#allocation2 + $0x10] sm:$0xff]  ;;  %s2003_s27 = sld [smem:[#allocation18_spill]]  ;;  %v159_v6 = vld [vmem:[%s1982_s5 + $0x28] sm:$0xff]  ;;  %vm313_vm1 = vcmask 130048   ;;  %vm1691_vm2 = vmmov 0  }
  0x5b   :  { %201 = vmatprep.subr.mxu0 %v164_v1  ;;  %272 = vmatprep.subr.mxu1 %v166_v2  ;;  %v161_v7 = vld [vmem:[%s1982_s5 + $0x38] sm:$0xff]  ;;  %v158_v8 = vld [vmem:[%s1982_s5 + $0x20] sm:$0xff]  ;;  %v160_v9 = vld [vmem:[%s1982_s5 + $0x30] sm:$0xff]  ;;  %s2004_s24 = sld [smem:[#allocation17_spill]] }
  0x5c   :  { %202 = vmatpush1.msra.mxu0 %v163_v3  ;;  %273 = vmatpush1.msra.mxu1 %v165_v4  ;;  %v155_v10 = vld [vmem:[%s1982_s5 + $0x8] sm:$0xff]  ;;  %v157_v11 = vld [vmem:[%s1982_s5 + $0x18] sm:$0xff]  ;;  %v154_v12 = vld [vmem:[%s1982_s5] sm:$0xff]  ;;  %s2005_s16 = sld [smem:[#allocation19_spill]] }
  0x5d   :  { %345 = vmatprep.subr.mxu0 %v159_v6  ;;  %416 = vmatprep.subr.mxu1 %v161_v7  ;;  %v156_v13 = vld [vmem:[%s1982_s5 + $0x10] sm:$0xff]  ;;  %v461_v15 = vld [vmem:[#allocation4 + $0x8] sm:$0xff]  ;;  %v463_v16 = vld [vmem:[#allocation4 + $0x18] sm:$0xff]  ;;  %s2006_s2 = sld [smem:[#allocation20_spill]] }
  0x5e   :  { %v460_v17 = vld [vmem:[#allocation4] sm:$0xff]  ;;  %v462_v18 = vld [vmem:[#allocation4 + $0x10] sm:$0xff]  ;;  %v675_v19 = vld [vmem:[#allocation6 + $0x1e8] sm:$0xff]  ;;  %s2007_s14 = sld [smem:[#allocation21_spill]] }
  0x5f   :  { %v677_v20 = vld [vmem:[#allocation6 + $0x1f8] sm:$0xff]  ;;  %v674_v22 = vld [vmem:[#allocation6 + $0x1e0] sm:$0xff]  ;;  %v676_v23 = vld [vmem:[#allocation6 + $0x1f0] sm:$0xff] }
  0x60   :  { %v162_v5 = vld [vmem:[%s2003_s27] sm:$0xff]  ;;  %v671_v24 = vld [vmem:[#allocation6 + $0x1c8] sm:$0xff]  ;;  %v673_v25 = vld [vmem:[#allocation6 + $0x1d8] sm:$0xff] }
  0x61   :  { %1276 = vmatmul.mubr.msk.f32.vlgmr.msra.gmra.mxu0 %vm167_vm0, %v162_v5  ;;  %1277 = vmatmul.mubr.msk.f32.vlgmr.msra.gmra.mxu1 %vm167_vm0, %v162_v5  ;;  %v153_v14 = vld [vmem:[%s2004_s24] sm:$0xff]  ;;  %v672_v27 = vld [vmem:[#allocation6 + $0x1d0] sm:$0xff]  ;;  %v667_v28 = vld [vmem:[#allocation6 + $0x1a8] sm:$0xff] }
  0x62   :  { %346 = vmatpush1.msra.mxu0 %v158_v8  ;;  %417 = vmatpush1.msra.mxu1 %v160_v9  ;;  %v459_v21 = vld [vmem:[%s2005_s16] sm:$0xff]  ;;  %v669_v29 = vld [vmem:[#allocation6 + $0x1b8] sm:$0xff]  ;;  %v668_v31 = vld [vmem:[#allocation6 + $0x1b0] sm:$0xff] }
  0x63   :  { %347 = vmatprep.subr.mxu0 %v155_v10  ;;  %418 = vmatprep.subr.mxu1 %v157_v11  ;;  %v670_v26 = vld [vmem:[#allocation6 + $0x1c0] sm:$0xff]  ;;  %v663_v32 = vld [vmem:[#allocation6 + $0x188] sm:$0xff]  ;;  %v665_v33 = vld [vmem:[#allocation6 + $0x198] sm:$0xff] }
  0x64   :  { %348 = vmatpush1.msra.mxu0 %v154_v12  ;;  %381 = vmatprep.mubr.f32.mxu0 %v1690_v0  ;;  %v666_v30 = vld [vmem:[#allocation6 + $0x1a0] sm:$0xff]  ;;  %v664_v35 = vld [vmem:[#allocation6 + $0x190] sm:$0xff]  ;;  %v659_v36 = vld [vmem:[#allocation6 + $0x168] sm:$0xff] }
  0x65   :  { %419 = vmatpush1.msra.mxu1 %v156_v13  ;;  %452 = vmatprep.mubr.f32.mxu1 %v1690_v0  ;;  %v662_v34 = vld [vmem:[#allocation6 + $0x180] sm:$0xff]  ;;  %v661_v37 = vld [vmem:[#allocation6 + $0x178] sm:$0xff]  ;;  %v660_v39 = vld [vmem:[#allocation6 + $0x170] sm:$0xff] }
  0x66   :  { %1278 = vmatmul.mubr.msk.f32.vlgmr.msra.gmra.mxu0 %vm313_vm1, %v153_v14  ;;  %1279 = vmatmul.mubr.msk.f32.vlgmr.msra.gmra.mxu1 %vm313_vm1, %v153_v14  ;;  %v658_v38 = vld [vmem:[#allocation6 + $0x160] sm:$0xff]  ;;  %v655_v40 = vld [vmem:[#allocation6 + $0x148] sm:$0xff]  ;;  %v657_v41 = vld [vmem:[#allocation6 + $0x158] sm:$0xff] }
  0x67   :  { %497 = vmatprep.subr.mxu0 %v461_v15  ;;  %568 = vmatprep.subr.mxu1 %v463_v16  ;;  %v654_v42 = vld [vmem:[#allocation6 + $0x140] sm:$0xff]  ;;  %v656_v43 = vld [vmem:[#allocation6 + $0x150] sm:$0xff]  ;;  %v651_v44 = vld [vmem:[#allocation6 + $0x128] sm:$0xff] }
  0x68   :  { %498 = vmatpush1.msra.mxu0 %v460_v17  ;;  %569 = vmatpush1.msra.mxu1 %v462_v18  ;;  %v653_v45 = vld [vmem:[#allocation6 + $0x138] sm:$0xff]  ;;  %v650_v46 = vld [vmem:[#allocation6 + $0x120] sm:$0xff]  ;;  %v652_v47 = vld [vmem:[#allocation6 + $0x130] sm:$0xff] }
  0x69   :  { %531 = vmatprep.mubr.f32.mxu0 %v1690_v0  ;;  %602 = vmatprep.mubr.f32.mxu1 %v1690_v0  ;;  %v647_v48 = vld [vmem:[#allocation6 + $0x108] sm:$0xff]  ;;  %v649_v49 = vld [vmem:[#allocation6 + $0x118] sm:$0xff]  ;;  %v646_v50 = vld [vmem:[#allocation6 + $0x100] sm:$0xff] }
  0x6a   :  { %678 = vmatprep.subr.mxu0 %v675_v19  ;;  %749 = vmatprep.subr.mxu1 %v677_v20  ;;  %v648_v51 = vld [vmem:[#allocation6 + $0x110] sm:$0xff]  ;;  %v643_v52 = vld [vmem:[#allocation6 + $0xe8] sm:$0xff]  ;;  %v645_v53 = vld [vmem:[#allocation6 + $0xf8] sm:$0xff] }
  0x6b   :  { %1280 = vmatmul.mubr.msk.f32.vlgmr.msra.gmra.mxu0 %vm167_vm0, %v459_v21  ;;  %1281 = vmatmul.mubr.msk.f32.vlgmr.msra.gmra.mxu1 %vm167_vm0, %v459_v21  ;;  %v642_v54 = vld [vmem:[#allocation6 + $0xe0] sm:$0xff]  ;;  %v644_v55 = vld [vmem:[#allocation6 + $0xf0] sm:$0xff]  ;;  %v639_v56 = vld [vmem:[#allocation6 + $0xc8] sm:$0xff] }
  0x6c   :  { %679 = vmatpush1.msra.mxu0 %v674_v22  ;;  %750 = vmatpush1.msra.mxu1 %v676_v23  ;;  %v641_v57 = vld [vmem:[#allocation6 + $0xd8] sm:$0xff]  ;;  %v638_v58 = vld [vmem:[#allocation6 + $0xc0] sm:$0xff]  ;;  %v640_v59 = vld [vmem:[#allocation6 + $0xd0] sm:$0xff] }
  0x6d   :  { %680 = vmatprep.subr.mxu0 %v671_v24  ;;  %751 = vmatprep.subr.mxu1 %v673_v25  ;;  %v635_v60 = vld [vmem:[#allocation6 + $0xa8] sm:$0xff]  ;;  %v637_v61 = vld [vmem:[#allocation6 + $0xb8] sm:$0xff]  ;;  %v634_v62 = vld [vmem:[#allocation6 + $0xa0] sm:$0xff] }
  0x6e   :  { %681 = vmatpush1.msra.mxu0 %v670_v26  ;;  %752 = vmatpush1.msra.mxu1 %v672_v27  ;;  %v636_v63 = vld [vmem:[#allocation6 + $0xb0] sm:$0xff]  ;;  %v631_v1 = vld [vmem:[#allocation6 + $0x88] sm:$0xff]  ;;  %v633_v2 = vld [vmem:[#allocation6 + $0x98] sm:$0xff] }
  0x6f   :  { %682 = vmatprep.subr.mxu0 %v667_v28  ;;  %753 = vmatprep.subr.mxu1 %v669_v29  ;;  %v630_v3 = vld [vmem:[#allocation6 + $0x80] sm:$0xff]  ;;  %v632_v4 = vld [vmem:[#allocation6 + $0x90] sm:$0xff]  ;;  %v627_v5 = vld [vmem:[#allocation6 + $0x68] sm:$0xff] }
  0x70   :  { %683 = vmatpush1.msra.mxu0 %v666_v30  ;;  %754 = vmatpush1.msra.mxu1 %v668_v31  ;;  %v629_v6 = vld [vmem:[#allocation6 + $0x78] sm:$0xff]  ;;  %v626_v7 = vld [vmem:[#allocation6 + $0x60] sm:$0xff]  ;;  %v628_v8 = vld [vmem:[#allocation6 + $0x70] sm:$0xff] }
  0x71   :  { %684 = vmatprep.subr.mxu0 %v663_v32  ;;  %755 = vmatprep.subr.mxu1 %v665_v33  ;;  %v623_v9 = vld [vmem:[#allocation6 + $0x48] sm:$0xff]  ;;  %v625_v10 = vld [vmem:[#allocation6 + $0x58] sm:$0xff]  ;;  %v622_v11 = vld [vmem:[#allocation6 + $0x40] sm:$0xff] }
  0x72   :  { %685 = vmatpush1.msra.mxu0 %v662_v34  ;;  %756 = vmatpush1.msra.mxu1 %v664_v35  ;;  %v624_v12 = vld [vmem:[#allocation6 + $0x50] sm:$0xff]  ;;  %v619_v13 = vld [vmem:[#allocation6 + $0x28] sm:$0xff]  ;;  %v621_v14 = vld [vmem:[#allocation6 + $0x38] sm:$0xff] }
  0x73   :  { %686 = vmatprep.subr.mxu0 %v659_v36  ;;  %757 = vmatprep.subr.mxu1 %v661_v37  ;;  %v618_v15 = vld [vmem:[#allocation6 + $0x20] sm:$0xff]  ;;  %v620_v16 = vld [vmem:[#allocation6 + $0x30] sm:$0xff]  ;;  %v615_v17 = vld [vmem:[#allocation6 + $0x8] sm:$0xff] }
  0x74   :  { %687 = vmatpush1.msra.mxu0 %v658_v38  ;;  %758 = vmatpush1.msra.mxu1 %v660_v39  ;;  %v617_v18 = vld [vmem:[#allocation6 + $0x18] sm:$0xff]  ;;  %v614_v19 = vld [vmem:[#allocation6] sm:$0xff]  ;;  %v616_v20 = vld [vmem:[#allocation6 + $0x10] sm:$0xff] }
  0x75   :  { %688 = vmatprep.subr.mxu0 %v655_v40  ;;  %759 = vmatprep.subr.mxu1 %v657_v41  ;;  %v613_v21 = vld [vmem:[%s2006_s2] sm:$0xff]  ;;  %v890_v22 = vld [vmem:[#allocation7 + $0x78] sm:$0xff]  ;;  %v889_v23 = vld [vmem:[#allocation7 + $0x70] sm:$0xff] }
  0x76   :  { %689 = vmatpush1.msra.mxu0 %v654_v42  ;;  %760 = vmatpush1.msra.mxu1 %v656_v43  ;;  %v888_v24 = vld [vmem:[#allocation7 + $0x68] sm:$0xff]  ;;  %v887_v25 = vld [vmem:[#allocation7 + $0x60] sm:$0xff]  ;;  %v886_v26 = vld [vmem:[#allocation7 + $0x58] sm:$0xff]  ;;  %v826_v43 = vlaneseq }
  0x77   :  { %690 = vmatprep.subr.mxu0 %v651_v44  ;;  %761 = vmatprep.subr.mxu1 %v653_v45  ;;  %v885_v27 = vld [vmem:[#allocation7 + $0x50] sm:$0xff]  ;;  %v884_v28 = vld [vmem:[#allocation7 + $0x48] sm:$0xff]  ;;  %v883_v29 = vld [vmem:[#allocation7 + $0x40] sm:$0xff] }
  0x78   :  { %691 = vmatpush1.msra.mxu0 %v650_v46  ;;  %762 = vmatpush1.msra.mxu1 %v652_v47  ;;  %v882_v30 = vld [vmem:[#allocation7 + $0x38] sm:$0xff]  ;;  %v881_v31 = vld [vmem:[#allocation7 + $0x30] sm:$0xff]  ;;  %v880_v32 = vld [vmem:[#allocation7 + $0x28] sm:$0xff]  ;;  %v827_v46 = vshrl.u32 %v826_v43, 7 }
  0x79   :  { %692 = vmatprep.subr.mxu0 %v647_v48  ;;  %763 = vmatprep.subr.mxu1 %v649_v49  ;;  %v879_v33 = vld [vmem:[#allocation7 + $0x20] sm:$0xff]  ;;  %v878_v34 = vld [vmem:[#allocation7 + $0x18] sm:$0xff]  ;;  %v877_v35 = vld [vmem:[#allocation7 + $0x10] sm:$0xff] }
  0x7a   :  { %693 = vmatpush1.msra.mxu0 %v646_v50  ;;  %764 = vmatpush1.msra.mxu1 %v648_v51  ;;  %v876_v36 = vld [vmem:[#allocation7 + $0x8] sm:$0xff]  ;;  %v875_v37 = vld [vmem:[#allocation7] sm:$0xff]  ;;  %v828_v49 = vsub.s32 0, %v827_v46 }
  0x7b   :  { %694 = vmatprep.subr.mxu0 %v643_v52  ;;  %765 = vmatprep.subr.mxu1 %v645_v53  ;;  %v824_v50 = vld [vmem:[%s1986_s9] sm:$0xf]  ;;  %v832_v53 = vsub.s32 1, %v827_v46  ;;  %v983_v43 = vld [vmem:[#allocation9 + $0x48] sm:$0xff] }
  0x7c   :  { %695 = vmatpush1.msra.mxu0 %v642_v54  ;;  %766 = vmatpush1.msra.mxu1 %v644_v55 }
  0x7d   :  { %696 = vmatprep.subr.mxu0 %v639_v56  ;;  %767 = vmatprep.subr.mxu1 %v641_v57  ;;  %v829_v57 = vrot.slane %v824_v50, %v828_v49  ;;  %v977_v49 = vld [vmem:[#allocation9 + $0x18] sm:$0xff] }
  0x7e   :  { %697 = vmatpush1.msra.mxu0 %v638_v58  ;;  %768 = vmatpush1.msra.mxu1 %v640_v59 }
  0x7f   :  { %698 = vmatprep.subr.mxu0 %v635_v60  ;;  %769 = vmatprep.subr.mxu1 %v637_v61 }
  0x80   :  { %699 = vmatpush1.msra.mxu0 %v634_v62  ;;  %770 = vmatpush1.msra.mxu1 %v636_v63  ;;  %v833_v62 = vrot.slane %v824_v50, %v832_v53  ;;  %v1084_v53 = vld [vmem:[#allocation10 + $0x78] sm:$0xff] }
  0x81   :  { %700 = vmatprep.subr.mxu0 %v631_v1  ;;  %771 = vmatprep.subr.mxu1 %v633_v2 }
  0x82   :  { %701 = vmatpush1.msra.mxu0 %v630_v3  ;;  %772 = vmatpush1.msra.mxu1 %v632_v4 }
  0x83   :  { %702 = vmatprep.subr.mxu0 %v627_v5  ;;  %773 = vmatprep.subr.mxu1 %v629_v6 }
  0x84   :  { %703 = vmatpush1.msra.mxu0 %v626_v7  ;;  %774 = vmatpush1.msra.mxu1 %v628_v8  ;;  %v840_v7 = vsub.s32 3, %v827_v46 }
  0x85   :  { %704 = vmatprep.subr.mxu0 %v623_v9  ;;  %775 = vmatprep.subr.mxu1 %v625_v10 }
  0x86   :  { %705 = vmatpush1.msra.mxu0 %v622_v11  ;;  %776 = vmatpush1.msra.mxu1 %v624_v12 }
  0x87   :  { %706 = vmatprep.subr.mxu0 %v619_v13  ;;  %777 = vmatprep.subr.mxu1 %v621_v14  ;;  %v841_v13 = vrot.slane %v824_v50, %v840_v7  ;;  %v836_v14 = vsub.s32 2, %v827_v46  ;;  %v980_v46 = vld [vmem:[#allocation9 + $0x30] sm:$0xff] }
  0x88   :  { %707 = vmatpush1.msra.mxu0 %v618_v15  ;;  %778 = vmatpush1.msra.mxu1 %v620_v16 }
  0x89   :  { %708 = vmatprep.subr.mxu0 %v615_v17  ;;  %779 = vmatprep.subr.mxu1 %v617_v18  ;;  %v837_v18 = vrot.slane %v824_v50, %v836_v14  ;;  %v976_v50 = vld [vmem:[#allocation9 + $0x10] sm:$0xff]  ;;  %v1179_v14 = vld [vmem:[#allocation12 + $0x78] sm:$0xff] }
  0x8a   :  { %709 = vmatpush1.msra.mxu0 %v614_v19  ;;  %742 = vmatprep.mubr.f32.mxu0 %v1690_v0 }
  0x8b   :  { %780 = vmatpush1.msra.mxu1 %v616_v20  ;;  %813 = vmatprep.mubr.f32.mxu1 %v1690_v0 }
  0x8c   :  { %743 = vmatmul.mubr.f32.vlgmr.msra.gmra.mxu0 %v613_v21  ;;  %814 = vmatmul.mubr.f32.vlgmr.msra.gmra.mxu1 %v613_v21 }
  0x8d   :  { %1358 = vmatprep.subr.mxu0 %v1690_v0  ;;  %1393 = vmatprep.subr.mxu1 %v1690_v0 }
  0x8e   :  { %1359 = vmatpush3.msra.mxu0 %v890_v22  ;;  %1390 = vmatprep.mubr.msk.f32.mxu0 %vm1691_vm2, %v1690_v0 }
  0x8f   :  { %1360 = vmatprep.subr.mxu0 %v1690_v0  ;;  %1425 = vmatprep.mubr.msk.f32.mxu1 %vm1691_vm2, %v1690_v0 }
  0x90   :  { %1361 = vmatpush3.msra.mxu0 %v889_v23 }
  0x91   :  { %1362 = vmatprep.subr.mxu0 %v1690_v0 }
  0x92   :  { %1363 = vmatpush3.msra.mxu0 %v888_v24 }
  0x93   :  { %1364 = vmatprep.subr.mxu0 %v1690_v0 }
  0x94   :  { %1365 = vmatpush3.msra.mxu0 %v887_v25 }
  0x95   :  { %1366 = vmatprep.subr.mxu0 %v1690_v0 }
  0x96   :  { %1367 = vmatpush3.msra.mxu0 %v886_v26 }
  0x97   :  { %1368 = vmatprep.subr.mxu0 %v1690_v0 }
  0x98   :  { %1369 = vmatpush3.msra.mxu0 %v885_v27  ;;  %v869_v27 = vld [vmem:[%s2007_s14] sm:$0xff] }
  0x99   :  { %1370 = vmatprep.subr.mxu0 %v1690_v0 }
  0x9a   :  { %1371 = vmatpush3.msra.mxu0 %v884_v28 }
  0x9b   :  { %1372 = vmatprep.subr.mxu0 %v1690_v0 }
  0x9c   :  { %1373 = vmatpush3.msra.mxu0 %v883_v29 }
  0x9d   :  { %1374 = vmatprep.subr.mxu0 %v1690_v0 }
  0x9e   :  { %1375 = vmatpush3.msra.mxu0 %v882_v30 }
  0x9f   :  { %1376 = vmatprep.subr.mxu0 %v1690_v0 }
  0xa0   :  { %1377 = vmatpush3.msra.mxu0 %v881_v31 }
  0xa1   :  { %1378 = vmatprep.subr.mxu0 %v1690_v0 }
  0xa2   :  { %1379 = vmatpush3.msra.mxu0 %v880_v32 }
  0xa3   :  { %1380 = vmatprep.subr.mxu0 %v1690_v0 }
  0xa4   :  { %1381 = vmatpush3.msra.mxu0 %v879_v33 }
  0xa5   :  { %1382 = vmatprep.subr.mxu0 %v1690_v0 }
  0xa6   :  { %1383 = vmatpush3.msra.mxu0 %v878_v34 }
  0xa7   :  { %1384 = vmatprep.subr.mxu0 %v1690_v0 }
  0xa8   :  { %1385 = vmatpush3.msra.mxu0 %v877_v35 }
  0xa9   :  { %1386 = vmatprep.subr.mxu0 %v1690_v0 }
  0xaa   :  { %1387 = vmatpush3.msra.mxu0 %v876_v36 }
  0xab   :  { %1388 = vmatprep.subr.mxu0 %v1690_v0 }
  0xac   :  { %1389 = vmatpush3.msra.mxu0 %v875_v37  ;;  %v989_v37 = vld [vmem:[#allocation9 + $0x78] sm:$0xff] }
  0xad   :  { %1428 = vmatprep.subr.mxu0 %v1690_v0  ;;  %1394 = vmatpush3.msra.mxu1 %v989_v37 }
  0xae   :  { %1395 = vmatprep.subr.mxu1 %v1690_v0 }
 0x121   :  { %v237_v38 = vpop.f32.mrf.mxu0  ;;  %v308_v39 = vpop.f32.mrf.mxu1 }
 0x123   :  { %v239_v40 = vpop.f32.mrf.mxu0  ;;  %v310_v41 = vpop.f32.mrf.mxu1 }
 0x126   :  { %v383_v42 = vpop.f32.mrf.mxu0  ;;  %v454_v44 = vpop.f32.mrf.mxu1 }
 0x127   :  { %v384_v51 = vadd.f32 %v383_v42, %v237_v38  ;;  %v455_v11 = vadd.f32 %v454_v44, %v308_v39  ;;  %v988_v38 = vld [vmem:[#allocation9 + $0x70] sm:$0xff]  ;;  %v987_v39 = vld [vmem:[#allocation9 + $0x68] sm:$0xff]  ;;  %v982_v44 = vld [vmem:[#allocation9 + $0x40] sm:$0xff] }
 0x128   :  { %v385_v45 = vpop.f32.mrf.mxu0  ;;  %v456_v47 = vpop.f32.mrf.mxu1  ;;  %1396 = vmatpush3.msra.mxu1 %v988_v38  ;;  %v984_v42 = vld [vmem:[#allocation9 + $0x50] sm:$0xff] }
 0x129   :  { %v386_v55 = vadd.f32 %v385_v45, %v239_v40  ;;  %v457_v4 = vadd.f32 %v456_v47, %v310_v41  ;;  %1397 = vmatprep.subr.mxu1 %v1690_v0  ;;  %v986_v40 = vld [vmem:[#allocation9 + $0x60] sm:$0xff]  ;;  %v985_v41 = vld [vmem:[#allocation9 + $0x58] sm:$0xff]  ;;  %v979_v47 = vld [vmem:[#allocation9 + $0x28] sm:$0xff] }
 0x12a   :  { %1398 = vmatpush3.msra.mxu1 %v987_v39  ;;  %v981_v45 = vld [vmem:[#allocation9 + $0x38] sm:$0xff] }
 0x12b   :  { %v533_v48 = vpop.f32.mrf.mxu0  ;;  %v604_v52 = vpop.f32.mrf.mxu1  ;;  %1399 = vmatprep.subr.mxu1 %v1690_v0 }
 0x12c   :  { %v609_v56 = vadd.f32 %v533_v48, %v384_v51  ;;  %v611_v15 = vadd.f32 %v604_v52, %v455_v11  ;;  %1400 = vmatpush3.msra.mxu1 %v986_v40  ;;  %v978_v48 = vld [vmem:[#allocation9 + $0x20] sm:$0xff]  ;;  %v975_v51 = vld [vmem:[#allocation9 + $0x8] sm:$0xff]  ;;  %v1071_v11 = vld [vmem:[#allocation10 + $0x10] sm:$0xff] }
 0x12d   :  { %v535_v54 = vpop.f32.mrf.mxu0  ;;  %v606_v60 = vpop.f32.mrf.mxu1  ;;  %1401 = vmatprep.subr.mxu1 %v1690_v0  ;;  %v974_v52 = vld [vmem:[#allocation9] sm:$0xff] }
 0x12e   :  { %v610_v59 = vadd.f32 %v535_v54, %v386_v55  ;;  %v612_v10 = vadd.f32 %v606_v60, %v457_v4  ;;  %1402 = vmatpush3.msra.mxu1 %v985_v41  ;;  %v1083_v54 = vld [vmem:[#allocation10 + $0x70] sm:$0xff]  ;;  %v1082_v55 = vld [vmem:[#allocation10 + $0x68] sm:$0xff]  ;;  %v1077_v60 = vld [vmem:[#allocation10 + $0x40] sm:$0xff] }
 0x12f   :  { %1403 = vmatprep.subr.mxu1 %v1690_v0 }
 0x130   :  { %1404 = vmatpush3.msra.mxu1 %v984_v42  ;;  %v1289_v42 = vld [vmem:[%s1994_s17] ss:$0 sm:$0xff] }
 0x131   :  { %1405 = vmatprep.subr.mxu1 %v1690_v0 }
 0x132   :  { %1406 = vmatpush3.msra.mxu1 %v983_v43 }
 0x133   :  { %1407 = vmatprep.subr.mxu1 %v1690_v0 }
 0x134   :  { %1408 = vmatpush3.msra.mxu1 %v982_v44 }
 0x135   :  { %1409 = vmatprep.subr.mxu1 %v1690_v0 }
 0x136   :  { %1410 = vmatpush3.msra.mxu1 %v981_v45 }
 0x137   :  { %1411 = vmatprep.subr.mxu1 %v1690_v0 }
 0x138   :  { %1412 = vmatpush3.msra.mxu1 %v980_v46 }
 0x139   :  { %1413 = vmatprep.subr.mxu1 %v1690_v0 }
 0x13a   :  { %1414 = vmatpush3.msra.mxu1 %v979_v47 }
 0x13b   :  { %1415 = vmatprep.subr.mxu1 %v1690_v0 }
 0x13c   :  { %1416 = vmatpush3.msra.mxu1 %v978_v48 }
 0x13d   :  { %1417 = vmatprep.subr.mxu1 %v1690_v0 }
 0x13e   :  { %1418 = vmatpush3.msra.mxu1 %v977_v49 }
 0x13f   :  { %1419 = vmatprep.subr.mxu1 %v1690_v0 }
 0x140   :  { %1420 = vmatpush3.msra.mxu1 %v976_v50 }
 0x141   :  { %1421 = vmatprep.subr.mxu1 %v1690_v0 }
 0x142   :  { %1422 = vmatpush3.msra.mxu1 %v975_v51 }
 0x143   :  { %1423 = vmatprep.subr.mxu1 %v1690_v0 }
 0x144   :  { %1424 = vmatpush3.msra.mxu1 %v974_v52 }
 0x145   :  { %1463 = vmatprep.subr.mxu1 %v1690_v0 }
 0x14c   :  { %v744_v58 = vpop.f32.mrf.mxu0  ;;  %v815_v2 = vpop.f32.mrf.mxu1 }
 0x14d   :  { %v820_v61 = vadd.f32 %v744_v58, %v609_v56  ;;  %v822_v17 = vadd.f32 %v815_v2, %v611_v15  ;;  %v1081_v56 = vld [vmem:[#allocation10 + $0x60] sm:$0xff]  ;;  %v1079_v58 = vld [vmem:[#allocation10 + $0x50] sm:$0xff] }
 0x14e   :  { %v746_v63 = vpop.f32.mrf.mxu0  ;;  %v817_v9 = vpop.f32.mrf.mxu1  ;;  %v1285_v2 = vld [vmem:[%s1988_s11] ss:$0 sm:$0xff]  ;;  %v1178_v15 = vld [vmem:[#allocation12 + $0x70] sm:$0xff] }
 0x14f   :  { %v846_v1 = vadd.f32 %v829_v57, %v820_v61  ;;  %v821_v3 = vadd.f32 %v746_v63, %v610_v59  ;;  %v823_v12 = vadd.f32 %v817_v9, %v612_v10  ;;  %v848_v21 = vadd.f32 %v837_v18, %v822_v17  ;;  %v1080_v57 = vld [vmem:[#allocation10 + $0x58] sm:$0xff]  ;;  %v1078_v59 = vld [vmem:[#allocation10 + $0x48] sm:$0xff]  ;;  %v1176_v17 = vld [vmem:[#allocation12 + $0x60] sm:$0xff] }
 0x150   :  { %v1076_v61 = vld [vmem:[#allocation10 + $0x38] sm:$0xff]  ;;  %v1074_v63 = vld [vmem:[#allocation10 + $0x28] sm:$0xff] }
 0x151   :  { %v1282_v5 = vmul.f32 -1.442695, %v846_v1  ;;  %v847_v6 = vadd.f32 %v833_v62, %v821_v3  ;;  %v849_v16 = vadd.f32 %v841_v13, %v823_v12  ;;  %v1075_v62 = vld [vmem:[#allocation10 + $0x30] sm:$0xff]  ;;  %v1073_v1 = vld [vmem:[#allocation10 + $0x20] sm:$0xff]  ;;  %v1072_v10 = vld [vmem:[#allocation10 + $0x18] sm:$0xff] }
 0x152   :  { %v1070_v12 = vld [vmem:[#allocation10 + $0x8] sm:$0xff]  ;;  %v1069_v13 = vld [vmem:[#allocation10] sm:$0xff]  ;;  %v1175_v18 = vld [vmem:[#allocation12 + $0x58] sm:$0xff] }
 0x153   :  { %1511 = vpow2.f32 %v1282_v5  ;;  %v1283_v8 = vmul.f32 -1.442695, %v847_v6  ;;  %v1284_v19 = vmul.f32 -1.442695, %v849_v16  ;;  %v1177_v16 = vld [vmem:[#allocation12 + $0x68] sm:$0xff] }
 0x155   :  { %1513 = vpow2.f32 %v1283_v8 }
 0x156   :  { %1515 = vpow2.f32 %v1284_v19  ;;  %v1174_v19 = vld [vmem:[#allocation12 + $0x50] sm:$0xff] }
 0x160   :  { %v1512_v20 = vpop.eup %1511 }
 0x161   :  { %v859_v22 = vadd.f32 1.0, %v1512_v20  ;;  %v1173_v20 = vld [vmem:[#allocation12 + $0x48] sm:$0xff] }
 0x162   :  { %v1514_v23 = vpop.eup %1513 }
 0x163   :  { %1517 = vrcp.f32 %v859_v22  ;;  %v860_v24 = vadd.f32 1.0, %v1514_v23  ;;  %v1516_v25 = vpop.eup %1515  ;;  %v1171_v22 = vld [vmem:[#allocation12 + $0x38] sm:$0xff]  ;;  %v1170_v23 = vld [vmem:[#allocation12 + $0x30] sm:$0xff] }
 0x164   :  { %1519 = vtanh.f32 %v848_v21  ;;  %v861_v30 = vadd.f32 1.0, %v1516_v25  ;;  %v1172_v21 = vld [vmem:[#allocation12 + $0x40] sm:$0xff] }
 0x165   :  { %1521 = vrcp.f32 %v860_v24  ;;  %v1169_v24 = vld [vmem:[#allocation12 + $0x28] sm:$0xff]  ;;  %v1168_v25 = vld [vmem:[#allocation12 + $0x20] sm:$0xff] }
 0x166   :  { %1523 = vrcp.f32 %v861_v30 }
 0x170   :  { %v1518_v26 = vpop.eup %1517 }
 0x171   :  { %v1520_v28 = vpop.eup %1519 }
 0x172   :  { %v1522_v29 = vpop.eup %1521  ;;  %v871_v31 = vmul.f32 %v1520_v28, %v1518_v26  ;;  %v1287_v26 = vld [vmem:[%s1990_s13] ss:$0 sm:$0xff] }
 0x173   :  { %v870_v32 = vmul.f32 %v1522_v29, %v869_v27  ;;  %v1524_v34 = vpop.eup %1523 }
 0x175   :  { %v872_v33 = vadd.f32 %v871_v31, %v870_v32  ;;  %v1167_v32 = vld [vmem:[#allocation12 + $0x18] sm:$0xff] }
 0x177   :  { %1525 = vtanh.f32 %v872_v33  ;;  %1259 = vst [vmem:[%s1997_s20] sm:$0xff] %v872_v33  ;;  %v1166_v33 = vld [vmem:[#allocation12 + $0x10] sm:$0xff] }
 0x184   :  { %v1526_v35 = vpop.eup %1525 }
 0x185   :  { %v874_v36 = vmul.f32 %v1526_v35, %v1524_v34  ;;  %v1165_v34 = vld [vmem:[#allocation12 + $0x8] sm:$0xff]  ;;  %v1164_v35 = vld [vmem:[#allocation12] sm:$0xff] }
 0x187   :  { %1391 = vmatmul.mubr.f32.vlgmr.msra.gmra.mxu0 %v874_v36  ;;  %1258 = vst [vmem:[%s1996_s19] sm:$0xff] %v874_v36  ;;  %v1288_v36 = vld [vmem:[%s1992_s15] ss:$0 sm:$0xff] }
 0x188   :  { %1460 = vmatprep.mubr.msk.f32.mxu0 %vm1691_vm2, %v1690_v0  ;;  %1429 = vmatpush3.msra.mxu0 %v1084_v53 }
 0x189   :  { %1430 = vmatprep.subr.mxu0 %v1690_v0 }
 0x18a   :  { %1431 = vmatpush3.msra.mxu0 %v1083_v54 }
 0x18b   :  { %1432 = vmatprep.subr.mxu0 %v1690_v0 }
 0x18c   :  { %1433 = vmatpush3.msra.mxu0 %v1082_v55 }
 0x18d   :  { %1434 = vmatprep.subr.mxu0 %v1690_v0 }
 0x18e   :  { %1435 = vmatpush3.msra.mxu0 %v1081_v56 }
 0x18f   :  { %1436 = vmatprep.subr.mxu0 %v1690_v0 }
 0x190   :  { %1437 = vmatpush3.msra.mxu0 %v1080_v57 }
 0x191   :  { %1438 = vmatprep.subr.mxu0 %v1690_v0 }
 0x192   :  { %1439 = vmatpush3.msra.mxu0 %v1079_v58 }
 0x193   :  { %1440 = vmatprep.subr.mxu0 %v1690_v0 }
 0x194   :  { %1441 = vmatpush3.msra.mxu0 %v1078_v59 }
 0x195   :  { %1442 = vmatprep.subr.mxu0 %v1690_v0 }
 0x196   :  { %1443 = vmatpush3.msra.mxu0 %v1077_v60 }
 0x197   :  { %1444 = vmatprep.subr.mxu0 %v1690_v0 }
 0x198   :  { %1445 = vmatpush3.msra.mxu0 %v1076_v61 }
 0x199   :  { %1446 = vmatprep.subr.mxu0 %v1690_v0 }
 0x19a   :  { %1447 = vmatpush3.msra.mxu0 %v1075_v62 }
 0x19b   :  { %1448 = vmatprep.subr.mxu0 %v1690_v0 }
 0x19c   :  { %1449 = vmatpush3.msra.mxu0 %v1074_v63 }
 0x19d   :  { %1450 = vmatprep.subr.mxu0 %v1690_v0 }
 0x19e   :  { %1451 = vmatpush3.msra.mxu0 %v1073_v1 }
 0x19f   :  { %1452 = vmatprep.subr.mxu0 %v1690_v0 }
 0x1a0   :  { %1453 = vmatpush3.msra.mxu0 %v1072_v10 }
 0x1a1   :  { %1454 = vmatprep.subr.mxu0 %v1690_v0 }
 0x1a2   :  { %1455 = vmatpush3.msra.mxu0 %v1071_v11 }
 0x1a3   :  { %1456 = vmatprep.subr.mxu0 %v1690_v0 }
 0x1a4   :  { %1457 = vmatpush3.msra.mxu0 %v1070_v12 }
 0x1a5   :  { %1458 = vmatprep.subr.mxu0 %v1690_v0 }
 0x1a6   :  { %1459 = vmatpush3.msra.mxu0 %v1069_v13 }
 0x247   :  { %v964_v3 = vpop.f32.mrf.mxu0 }
 0x248   :  { %v965_v4 = vadd.f32 %v1285_v2, %v964_v3 }
 0x249   :  { %v1392_v5 = vpop.f32.mrf.mxu0 }
 0x24a   :  { %v1286_v6 = vmul.f32 -1.442695, %v965_v4 }
 0x24c   :  { %1527 = vpow2.f32 %v1286_v6 }
 0x259   :  { %v1528_v7 = vpop.eup %1527 }
 0x25a   :  { %v971_v8 = vadd.f32 1.0, %v1528_v7 }
 0x25c   :  { %1529 = vrcp.f32 %v971_v8 }
 0x269   :  { %v1530_v9 = vpop.eup %1529 }
 0x26a   :  { %1426 = vmatmul.mubr.f32.vlgmr.msra.gmra.mxu1 %v1530_v9 }
 0x26b   :  { %1495 = vmatprep.mubr.msk.f32.mxu1 %vm1691_vm2, %v1690_v0  ;;  %1464 = vmatpush3.msra.mxu1 %v1179_v14 }
 0x26c   :  { %1465 = vmatprep.subr.mxu1 %v1690_v0 }
 0x26d   :  { %1466 = vmatpush3.msra.mxu1 %v1178_v15 }
 0x26e   :  { %1467 = vmatprep.subr.mxu1 %v1690_v0 }
 0x26f   :  { %1468 = vmatpush3.msra.mxu1 %v1177_v16 }
 0x270   :  { %1469 = vmatprep.subr.mxu1 %v1690_v0 }
 0x271   :  { %1470 = vmatpush3.msra.mxu1 %v1176_v17 }
 0x272   :  { %1471 = vmatprep.subr.mxu1 %v1690_v0 }
 0x273   :  { %1472 = vmatpush3.msra.mxu1 %v1175_v18 }
 0x274   :  { %1473 = vmatprep.subr.mxu1 %v1690_v0 }
 0x275   :  { %1474 = vmatpush3.msra.mxu1 %v1174_v19 }
 0x276   :  { %1475 = vmatprep.subr.mxu1 %v1690_v0 }
 0x277   :  { %1476 = vmatpush3.msra.mxu1 %v1173_v20 }
 0x278   :  { %1477 = vmatprep.subr.mxu1 %v1690_v0 }
 0x279   :  { %1478 = vmatpush3.msra.mxu1 %v1172_v21 }
 0x27a   :  { %1479 = vmatprep.subr.mxu1 %v1690_v0 }
 0x27b   :  { %1480 = vmatpush3.msra.mxu1 %v1171_v22 }
 0x27c   :  { %1481 = vmatprep.subr.mxu1 %v1690_v0 }
 0x27d   :  { %1482 = vmatpush3.msra.mxu1 %v1170_v23 }
 0x27e   :  { %1483 = vmatprep.subr.mxu1 %v1690_v0 }
 0x27f   :  { %1484 = vmatpush3.msra.mxu1 %v1169_v24 }
 0x280   :  { %1485 = vmatprep.subr.mxu1 %v1690_v0 }
 0x281   :  { %1486 = vmatpush3.msra.mxu1 %v1168_v25 }
 0x282   :  { %1487 = vmatprep.subr.mxu1 %v1690_v0 }
 0x283   :  { %1488 = vmatpush3.msra.mxu1 %v1167_v32 }
 0x284   :  { %1489 = vmatprep.subr.mxu1 %v1690_v0 }
 0x285   :  { %1490 = vmatpush3.msra.mxu1 %v1166_v33 }
 0x286   :  { %1491 = vmatprep.subr.mxu1 %v1690_v0 }
 0x287   :  { %1492 = vmatpush3.msra.mxu1 %v1165_v34 }
 0x288   :  { %1493 = vmatprep.subr.mxu1 %v1690_v0 }
 0x289   :  { %1494 = vmatpush3.msra.mxu1 %v1164_v35 }
 0x32a   :  { %v1063_v27 = vpop.f32.mrf.mxu1 }
 0x32b   :  { %v1064_v28 = vadd.f32 %v1287_v26, %v1063_v27 }
 0x32c   :  { %v1427_v29 = vpop.f32.mrf.mxu1 }
 0x32d   :  { %v1067_v30 = vmul.f32 0.2, %v1064_v28 }
 0x32f   :  { %v1068_v31 = vmax.f32 %v1064_v28, %v1067_v30 }
 0x331   :  { %1461 = vmatmul.mubr.f32.vlgmr.msra.gmra.mxu0 %v1068_v31 }
 0x3f1   :  { %v1158_v37 = vpop.f32.mrf.mxu0 }
 0x3f2   :  { %v1159_v38 = vadd.f32 %v1288_v36, %v1158_v37 }
 0x3f3   :  { %v1462_v39 = vpop.f32.mrf.mxu0 }
 0x3f4   :  { %v1162_v40 = vmul.f32 0.2, %v1159_v38 }
 0x3f6   :  { %v1163_v41 = vmax.f32 %v1159_v38, %v1162_v40 }
 0x3f8   :  { %1496 = vmatmul.mubr.f32.vlgmr.msra.gmra.mxu1 %v1163_v41 }
 0x4b8   :  { %v1253_v43 = vpop.f32.mrf.mxu1 }
 0x4b9   :  { %v1254_v44 = vadd.f32 %v1289_v42, %v1253_v43 }
 0x4ba   :  { %v1497_v45 = vpop.f32.mrf.mxu1 }
 0x4bb   :  { %1257 = vst [vmem:[%s1995_s18] sm:$0xff] %v1254_v44 }
 0x4bc   :  { %1272 = vsyncpa [#allocation3], 1 }
 0x4bd   :  { %1273 = vsyncpa [#allocation5], 1 }
 0x4be   :  { %1274 = vsyncpa [#allocation8], 1 }
 0x4bf   :  { %1275 = vsyncpa [#allocation11], 1 }

</bundles_post_ra>
